<compile_context>
chip_gen: v7x
topology: tpu7x:2x2x1
jax: 0.10.0
libtpu: 0.0.40
codegen_flags: <defaults>
</compile_context>

<pallas_src>
import numpy as np
import jax
import jax.numpy as jnp
from jax import lax
from jax.experimental import pallas as pl
from jax.experimental.pallas import tpu as pltpu


# ------------------------------ Pallas kernel ------------------------------

def dsconv_kernel(x_ref, w_ref, b_ref, o_ref):
    """Fused depthwise(1xK, groups=Cin) + pointwise(1x1) conv, one dot per step.

    x_ref: (BN, Cin, H*W)   per-sample pixel slabs, pixels on lanes
    w_ref: (Cout, K*Cin)    fused weight, column index = k*Cin + ci
    b_ref: (Cout, 1)        fused bias
    o_ref: (BN, Cout, H*W)  output slabs (columns w >= W-K+1 of each image row
                            are wrap garbage, discarded / ignored downstream)
    """
    bn, cin, hw = x_ref.shape
    k = w_ref.shape[1] // cin            # temporal tap count (static)

    # Lane-concatenate the BN samples into one (Cin, BN*HW) slab.  Lane offsets
    # are multiples of HW (a multiple of 128 here), so these are aligned copies.
    if bn == 1:
        x_lane = x_ref[0]
    else:
        x_lane = jnp.concatenate([x_ref[s] for s in range(bn)], axis=1)

    # im2col along the contraction dim via K static lane-rolls of the whole
    # slab (row index of `cols` = kk*Cin + ci).  Rolls that wrap across a
    # sample boundary only touch the already-garbage columns w >= W-K+1 of the
    # last image row, so roll-after-concat is exact for the valid columns.
    cols = jnp.concatenate(
        [x_lane if kk == 0 else jnp.roll(x_lane, -kk, axis=1) for kk in range(k)],
        axis=0)                          # (K*Cin, BN*HW)

    # ONE MXU matmul per grid step; bias broadcast hoisted out of any loop.
    y = jnp.dot(w_ref[...], cols, preferred_element_type=jnp.float32)  # (Cout, BN*HW)
    y = y + b_ref[...]

    # Lane-slice the fused result back into the (BN, Cout, HW) output block.
    # Static, HW-aligned slices -> unmasked lane-dense stores.
    for s in range(bn):
        o_ref[s] = y[:, s * hw:(s + 1) * hw]


# ------------------------------ host wrapper ------------------------------

def _pick_block_batch(N, Cin, Cout, HW, itemsize, target_bytes=2 << 20):
    """Samples per grid step: ~target_bytes of in+out per step, grid >= 2."""
    per_sample = (Cin + Cout) * HW * itemsize
    bn = max(1, target_bytes // per_sample)
    if N >= 2:
        bn = min(bn, -(-N // 2))         # keep at least 2 grid steps (megacore / pipeline)
    return int(min(bn, N))


def depthwise_separable_conv_forward(x_nchw, w_fused, b_fused, *, return_padded=False):
    """x_nchw: (N, Cin, H, W) f32 -> (N, Cout, H, W-K+1) f32 (module semantics).

    With return_padded=True the padded (N, Cout, H, W) slab is returned instead
    (columns w >= W-K+1 are garbage), avoiding the extra HBM pass of the slice
    when a fused downstream op can consume the padded layout.
    """
    N, Cin, H, W = x_nchw.shape
    Cout = w_fused.shape[0]
    K = w_fused.shape[1] // Cin
    Wout = W - K + 1
    HW = H * W
    # NOTE: for very large H*W a second grid axis tiling HW in 128-lane
    # multiples would be needed to stay inside per-generation VMEM budgets.

    # Free metadata reshape (row-major NCHW -> (N, Cin, H*W), no transpose).
    xf = x_nchw.reshape(N, Cin, HW)

    BN = _pick_block_batch(N, Cin, Cout, HW, x_nchw.dtype.itemsize)
    grid = (pl.cdiv(N, BN),)             # non-divisible N: tail writes are clipped

    out_flat = pl.pallas_call(
        dsconv_kernel,
        out_shape=jax.ShapeDtypeStruct((N, Cout, HW), jnp.float32),
        grid=grid,
        in_specs=[
            pl.BlockSpec((BN, Cin, HW), lambda i: (i, 0, 0)),
            pl.BlockSpec((Cout, K * Cin), lambda i: (0, 0)),   # resident weight
            pl.BlockSpec((Cout, 1), lambda i: (0, 0)),         # resident bias
        ],
        out_specs=pl.BlockSpec((BN, Cout, HW), lambda i: (i, 0, 0)),
        compiler_params=pltpu.CompilerParams(
            dimension_semantics=("parallel",),        # batch axis -> dual TC on v7x
            vmem_limit_bytes=32 * 1024 * 1024,        # explicit: ok on v5e/v6e/v7x
        ),
    )(xf, w_fused, b_fused)

    padded = out_flat.reshape(N, Cout, H, W)          # free metadata reshape
    if return_padded:
        return padded
    return padded[:, :, :, :Wout]


# --------------------------- parameter construction ---------------------------

def make_torch_params(key, nin, nout, K):
    """Deterministic synthetic params with PyTorch Conv2d shapes."""
    k1, k2, k3, k4 = jax.random.split(key, 4)
    Wd = jax.random.normal(k1, (nout, 1, 1, K), jnp.float32) / np.sqrt(K)
    bd = 0.1 * jax.random.normal(k2, (nout,), jnp.float32)
    Wp = jax.random.normal(k3, (nout, nout, 1, 1), jnp.float32) / np.sqrt(nout)
    bp = 0.1 * jax.random.normal(k4, (nout,), jnp.float32)
    return Wd, bd, Wp, bp


def fold_params(Wd, bd, Wp, bp, nin):
    """Fuse depthwise (groups=nin) + pointwise convs into one dense weight (exact).

    Depthwise output channel m uses input channel m // (nout // nin), matching
    PyTorch groups=nin semantics.
    """
    hp = lax.Precision.HIGHEST
    nout = Wd.shape[0]
    K = Wd.shape[3]
    assert nout % nin == 0, "depthwise with groups=nin requires nout % nin == 0"
    cm = nout // nin
    Wd3 = Wd[:, 0, 0, :].reshape(nin, cm, K)        # [ci, c, k]
    Wp3 = Wp[:, :, 0, 0].reshape(nout, nin, cm)     # [o, ci, c]
    # w_fused[o, k*nin + ci] = sum_c Wp[o, ci*cm+c] * Wd[ci*cm+c, k]
    A = jnp.einsum('oic,ick->oki', Wp3, Wd3, precision=hp)   # (nout, K, nin)
    w_fused = A.reshape(nout, K * nin)
    b_fused = bp + jnp.einsum('om,m->o', Wp[:, :, 0, 0], bd, precision=hp)
    return w_fused, b_fused.reshape(nout, 1)


# ------------------------ pure-JAX reference (exact module) ------------------------

def reference_forward(x, Wd, bd, Wp, bp, nin):
    hp = lax.Precision.HIGHEST
    dn = ('NCHW', 'OIHW', 'NCHW')
    y = lax.conv_general_dilated(x, Wd, (1, 1), 'VALID', dimension_numbers=dn,
                                 feature_group_count=nin, precision=hp)
    y = y + bd[None, :, None, None]
    z = lax.conv_general_dilated(y, Wp, (1, 1), 'VALID', dimension_numbers=dn,
                                 precision=hp)
    return z + bp[None, :, None, None]


# ------------------------------------ main ------------------------------------

if __name__ == "__main__":
    # Small shapes consistent with the module: batch=4, nin=4, nout=8, K=5,
    # input (N, nin, H, W) = (4, 4, 16, 32) -> output (4, 8, 16, 28).
    # N=4 exercises the multi-sample-per-block path (BN=2) with a 2-step grid.
    N, nin, nout, K, H, W = 4, 4, 8, 5, 16, 32

    key = jax.random.PRNGKey(0)
    kx, kp = jax.random.split(key)
    x = jax.random.normal(kx, (N, nin, H, W), jnp.float32)
    Wd, bd, Wp, bp = make_torch_params(kp, nin, nout, K)

    w_fused, b_fused = fold_params(Wd, bd, Wp, bp, nin)

    forward = jax.jit(depthwise_separable_conv_forward)
    out = jax.block_until_ready(forward(x, w_fused, b_fused))
    assert out.shape == (N, nout, H, W - K + 1)

    ref = reference_forward(x, Wd, bd, Wp, bp, nin)
    np.testing.assert_allclose(np.asarray(out), np.asarray(ref),
                               rtol=1e-4, atol=1e-4)

    print("KERNEL_OK")
</pallas_src>

<mosaic_0001>
module attributes {stable_mosaic.version = 11 : i64} {
  func.func @dsconv_kernel(%arg0: i32, %arg1: memref<2x4x512xf32, #tpu.memory_space<vmem>>, %arg2: memref<8x20xf32, #tpu.memory_space<vmem>>, %arg3: memref<8x1xf32, #tpu.memory_space<vmem>>, %arg4: memref<2x8x512xf32, #tpu.memory_space<vmem>>) attributes {dimension_semantics = [#tpu.dimension_semantics<parallel>], iteration_bounds = array<i64: 2>, scalar_prefetch = 0 : i64, scratch_operands = 0 : i64, tpu.core_type = #tpu.core_type<tc>, window_params = [{transform_indices = @transform_0, window_bounds = array<i64: 2, 4, 512>}, {pipeline_mode = #tpu.pipeline_mode<synchronous>, transform_indices = @transform_1, window_bounds = array<i64: 8, 20>}, {pipeline_mode = #tpu.pipeline_mode<synchronous>, transform_indices = @transform_2, window_bounds = array<i64: 8, 1>}, {transform_indices = @transform_3, window_bounds = array<i64: 2, 8, 512>}]} {
    %c0 = arith.constant 0 : index
    %c0_0 = arith.constant 0 : index
    %c0_1 = arith.constant 0 : index
    %0 = vector.load %arg1[%c0, %c0_0, %c0_1] : memref<2x4x512xf32, #tpu.memory_space<vmem>>, vector<1x4x512xf32>
    %1 = vector.shape_cast %0 : vector<1x4x512xf32> to vector<4x512xf32>
    %c1 = arith.constant 1 : index
    %c0_2 = arith.constant 0 : index
    %c0_3 = arith.constant 0 : index
    %2 = vector.load %arg1[%c1, %c0_2, %c0_3] : memref<2x4x512xf32, #tpu.memory_space<vmem>>, vector<1x4x512xf32>
    %3 = vector.shape_cast %2 : vector<1x4x512xf32> to vector<4x512xf32>
    %4 = tpu.concatenate %1, %3 in 1 : vector<4x512xf32>, vector<4x512xf32> -> vector<4x1024xf32>
    %5 = vector.extract_strided_slice %4 {offsets = [0, 1], sizes = [4, 1023], strides = [1, 1]} : vector<4x1024xf32> to vector<4x1023xf32>
    %6 = vector.extract_strided_slice %4 {offsets = [0, 0], sizes = [4, 1], strides = [1, 1]} : vector<4x1024xf32> to vector<4x1xf32>
    %7 = tpu.concatenate %5, %6 in 1 : vector<4x1023xf32>, vector<4x1xf32> -> vector<4x1024xf32>
    %8 = vector.extract_strided_slice %4 {offsets = [0, 2], sizes = [4, 1022], strides = [1, 1]} : vector<4x1024xf32> to vector<4x1022xf32>
    %9 = vector.extract_strided_slice %4 {offsets = [0, 0], sizes = [4, 2], strides = [1, 1]} : vector<4x1024xf32> to vector<4x2xf32>
    %10 = tpu.concatenate %8, %9 in 1 : vector<4x1022xf32>, vector<4x2xf32> -> vector<4x1024xf32>
    %11 = vector.extract_strided_slice %4 {offsets = [0, 3], sizes = [4, 1021], strides = [1, 1]} : vector<4x1024xf32> to vector<4x1021xf32>
    %12 = vector.extract_strided_slice %4 {offsets = [0, 0], sizes = [4, 3], strides = [1, 1]} : vector<4x1024xf32> to vector<4x3xf32>
    %13 = tpu.concatenate %11, %12 in 1 : vector<4x1021xf32>, vector<4x3xf32> -> vector<4x1024xf32>
    %14 = vector.extract_strided_slice %4 {offsets = [0, 4], sizes = [4, 1020], strides = [1, 1]} : vector<4x1024xf32> to vector<4x1020xf32>
    %15 = vector.extract_strided_slice %4 {offsets = [0, 0], sizes = [4, 4], strides = [1, 1]} : vector<4x1024xf32> to vector<4x4xf32>
    %16 = tpu.concatenate %14, %15 in 1 : vector<4x1020xf32>, vector<4x4xf32> -> vector<4x1024xf32>
    %17 = tpu.concatenate %4, %7, %10, %13, %16 in 0 : vector<4x1024xf32>, vector<4x1024xf32>, vector<4x1024xf32>, vector<4x1024xf32>, vector<4x1024xf32> -> vector<20x1024xf32>
    %c0_4 = arith.constant 0 : index
    %c0_5 = arith.constant 0 : index
    %18 = vector.load %arg2[%c0_4, %c0_5] : memref<8x20xf32, #tpu.memory_space<vmem>>, vector<8x20xf32>
    %cst = arith.constant dense<0.000000e+00> : vector<8x1024xf32>
    %19 = tpu.matmul %18, %17, %cst {dimension_numbers = #tpu.dot_dimension_numbers<[1], [0], [0], [1], [0, 0, 1, 1], [], []>} : vector<8x20xf32>, vector<20x1024xf32>, vector<8x1024xf32> -> vector<8x1024xf32>
    %c0_6 = arith.constant 0 : index
    %c0_7 = arith.constant 0 : index
    %20 = vector.load %arg3[%c0_6, %c0_7] : memref<8x1xf32, #tpu.memory_space<vmem>>, vector<8x1xf32>
    %21 = vector.broadcast %20 : vector<8x1xf32> to vector<8x1024xf32>
    %22 = arith.addf %19, %21 : vector<8x1024xf32>
    %23 = vector.extract_strided_slice %22 {offsets = [0, 0], sizes = [8, 512], strides = [1, 1]} : vector<8x1024xf32> to vector<8x512xf32>
    %c0_8 = arith.constant 0 : index
    %c0_9 = arith.constant 0 : index
    %c0_10 = arith.constant 0 : index
    %24 = vector.load %arg4[%c0_8, %c0_9, %c0_10] : memref<2x8x512xf32, #tpu.memory_space<vmem>>, vector<1x8x512xf32>
    %25 = vector.shape_cast %24 : vector<1x8x512xf32> to vector<8x512xf32>
    %26 = vector.shape_cast %23 : vector<8x512xf32> to vector<1x8x512xf32>
    tpu.vector_store %arg4[%c0_8, %c0_9, %c0_10], %26 {strides = array<i32>} : memref<2x8x512xf32, #tpu.memory_space<vmem>>, vector<1x8x512xf32>,
    %27 = vector.extract_strided_slice %22 {offsets = [0, 512], sizes = [8, 512], strides = [1, 1]} : vector<8x1024xf32> to vector<8x512xf32>
    %c1_11 = arith.constant 1 : index
    %c0_12 = arith.constant 0 : index
    %c0_13 = arith.constant 0 : index
    %28 = vector.load %arg4[%c1_11, %c0_12, %c0_13] : memref<2x8x512xf32, #tpu.memory_space<vmem>>, vector<1x8x512xf32>
    %29 = vector.shape_cast %28 : vector<1x8x512xf32> to vector<8x512xf32>
    %30 = vector.shape_cast %27 : vector<8x512xf32> to vector<1x8x512xf32>
    tpu.vector_store %arg4[%c1_11, %c0_12, %c0_13], %30 {strides = array<i32>} : memref<2x8x512xf32, #tpu.memory_space<vmem>>, vector<1x8x512xf32>,
    return
  }
  func.func @transform_0(%arg0: i32) -> (i32, i32, i32) {
    %c0_i32 = arith.constant 0 : i32
    %c0_i32_0 = arith.constant 0 : i32
    %c0_i32_1 = arith.constant 0 : i32
    return %arg0, %c0_i32, %c0_i32_0 : i32, i32, i32
  }
  func.func @transform_1(%arg0: i32) -> (i32, i32) {
    %c0_i32 = arith.constant 0 : i32
    %c0_i32_0 = arith.constant 0 : i32
    %c0_i32_1 = arith.constant 0 : i32
    return %c0_i32, %c0_i32_0 : i32, i32
  }
  func.func @transform_2(%arg0: i32) -> (i32, i32) {
    %c0_i32 = arith.constant 0 : i32
    %c0_i32_0 = arith.constant 0 : i32
    %c0_i32_1 = arith.constant 0 : i32
    return %c0_i32, %c0_i32_0 : i32, i32
  }
  func.func @transform_3(%arg0: i32) -> (i32, i32, i32) {
    %c0_i32 = arith.constant 0 : i32
    %c0_i32_0 = arith.constant 0 : i32
    %c0_i32_1 = arith.constant 0 : i32
    return %arg0, %c0_i32, %c0_i32_0 : i32, i32, i32
  }
}

</mosaic_0001>

<bundles_post_ra>
// kernel: depthwise_separable_conv_forward.1
= control target key start
LH: loop header
LB: loop body
LE: loop exit
PB: predicated region body
PF: predicated region fallthrough
CT: control target
= control target key end

     0   :  { %s903_s12 = smov 0   ;;  %s1066_s0 = inlined_call_operand.vmem [shape: f32[4,4,512], index: 0, kind: input, shape index: {}]   ;;  %s1067_s1 = inlined_call_operand.vmem [shape: f32[8,20], index: 1, kind: input, shape index: {}]   ;;  %s1068_s2 = inlined_call_operand.vmem [shape: f32[8,1], index: 2, kind: input, shape index: {}]   ;;  %s1069_s3 = inlined_call_operand.vmem [shape: f32[4,8,512], index: 3, kind: output, shape index: {}]  }
   0x1 LB: > { %s741_s13 = sadd.s32 4294967295, %s875_s12   ;;  %p745_p0 = scmp.ge.s32.totalorder %s875_s12, 1  ;;  %s875_s12 = sphi %s903_s12, %s13_s12  }
   0x2   : > { %p139_p1 = scmp.lt.s32.totalorder %s875_s12, 3 }
   0x4   : > { %p140_p2 = pnand %p745_p0, %p139_p1 }
   0x5   : > { %s746_s14 = sshll.u32 (!%p140_p2), %s741_s13, 1  ;;  %s877_s19 = smov (!%p140_p2), 125   ;;  %v880_v12 = vmov (!%p140_p2), 0.0   ;;  %v882_v13 = vmov (!%p140_p2), 0   ;;  %v363_v14 = vld [vmem:[%s1068_s2] sm:$0xff] (!%p140_p2)  ;;  %vm212_vm0 = vcmask (!%p140_p2), 1039360  }
   0x6   : > { %143 = sbr.rel (%p140_p2) target bundleno = 392 (0x188), region = 32  ;;  %p166_p3 = scmp.lt.s32.totalorder (!%p140_p2), %s746_s14, 3  ;;  %525 = vmatprep.mubr.f32.mxu1 (!%p140_p2), %v880_v12  ;;  %454 = vmatprep.mubr.f32.mxu0 (!%p140_p2), %v880_v12  ;;  %vm273_vm1 = vcmask (!%p140_p2), 1022976   ;;  %vm345_vm2 = vcmask (!%p140_p2), 1043456   ;;  %vm239_vm3 = vcmask (!%p140_p2), 1031168   ;;  %vm300_vm4 = vcmask (!%p140_p2), 1014784  }
   0x7   : > { %s878_s20 = smov (!%p140_p2), 127   ;;  %s879_s21 = smov (!%p140_p2), 126   ;;  %864 = vset.pattern.permute.xlu0 (!%p140_p2), %v882_v13  ;;  %vm369_vm5 = vcmask (!%p140_p2), 162816  }
   0x8   : > { %s881_s22 = smov (!%p140_p2), 124  }
   0xd   : > { %s1071_s14 = smov (!%p166_p3, %s746_s14), 3 }
   0xe   : > { %s772_s15 = sshll.u32 %s1071_s14, 4  ;;  %s773_s27 = sshll.u32 %s1071_s14, 5 }
   0xf   : > { %s170_s18 = scalar_lea.vmem %s1066_s0, %s772_s15  ;;  %s177_s30 = scalar_lea.vmem %s1069_s3, %s773_s27 }
  0x10   : > { %v917_v0 = vld [vmem:[%s170_s18] sm:$0xff]  ;;  %v919_v1 = vld [vmem:[%s170_s18 + $0x8] sm:$0xff]  ;;  %v929_v4 = vld [vmem:[%s170_s18 + $0x10] sm:$0xff] }
  0x11   : > { %v923_v2 = vcombine.high %v917_v0, %v917_v0  ;;  %v927_v3 = vcombine.high %v919_v1, %v919_v1  ;;  %v937_v7 = vcombine.high %v929_v4, %v929_v4  ;;  %v941_v9 = vld [vmem:[%s170_s18 + $0x18] sm:$0xff] }
  0x12   : > { %v945_v10 = vcombine.high %v941_v9, %v941_v9 }
  0x13   : > { %v814_v5 = vpack.i.bf16 %v919_v1, %v923_v2  ;;  %v819_v6 = vpack.i.bf16 %v929_v4, %v927_v3  ;;  %v829_v8 = vpack.i.bf16 %v937_v7, %v917_v0 }
  0x14   : > { %v849_v11 = vpack.i.bf16 %v945_v10, %v941_v9 }
  0x15   : > { %815 = vrot.lane.b32.xlu1 %v814_v5, %s877_s19  ;;  %805 = vrot.lane.b32.xlu0 %v814_v5, %s878_s20 }
  0x19   : > { %820 = vrot.lane.b32.xlu1 %v819_v6, %s877_s19  ;;  %810 = vrot.lane.b32.xlu0 %v819_v6, %s878_s20 }
  0x1d   : > { %830 = vrot.lane.b32.xlu1 %v829_v8, %s877_s19  ;;  %825 = vrot.lane.b32.xlu0 %v829_v8, %s878_s20 }
  0x21   : > { %840 = vrot.lane.b32.xlu1 %v819_v6, %s879_s21  ;;  %835 = vrot.lane.b32.xlu0 %v814_v5, %s879_s21 }
  0x25   : > { %850 = vrot.lane.b32.xlu1 %v849_v11, %s878_s20  ;;  %845 = vrot.lane.b32.xlu0 %v829_v8, %s879_s21 }
  0x29   : > { %860 = vrot.lane.b32.xlu1 %v849_v11, %s879_s21  ;;  %855 = vrot.lane.b32.xlu0 %v849_v11, %s877_s19 }
  0x2d   : > { %288 = vrot.lane.b32.xlu1 %v919_v1, %s881_s22  ;;  %286 = vrot.lane.b32.xlu0 %v923_v2, %s881_s22 }
  0x31   : > { %292 = vrot.lane.b32.xlu1 %v929_v4, %s881_s22  ;;  %290 = vrot.lane.b32.xlu0 %v927_v3, %s881_s22 }
  0x35   : > { %294 = vrot.lane.b32.xlu1 %v937_v7, %s881_s22  ;;  %284 = vrot.lane.b32.xlu0 %v917_v0, %s881_s22 }
  0x39   : > { %298 = vrot.lane.b32.xlu1 %v945_v10, %s881_s22  ;;  %296 = vrot.lane.b32.xlu0 %v941_v9, %s881_s22 }
  0x3d   : > { %366 = vperm.xlu0 %864, %v363_v14  }
  0x87   : > { %v816_v15 = vpop.permute.xlu1 %815  ;;  %v806_v16 = vpop.permute.xlu0 %805 }
  0x88   : > { %v808_v17 = vunpack.i.h.bf16 %v806_v16  ;;  %v807_v18 = vunpack.i.l.bf16 %v806_v16  ;;  %v818_v19 = vunpack.i.h.bf16 %v816_v15  ;;  %v817_v20 = vunpack.i.l.bf16 %v816_v15 }
  0x8a   : > { %v214_v25 = vsel %vm212_vm0, %v807_v18, %v808_v17  ;;  %v275_v30 = vsel %vm273_vm1, %v817_v20, %v818_v19 }
  0x8b   : > { %v821_v21 = vpop.permute.xlu1 %820  ;;  %v962_v22 = vpop.permute.xlu0 %810  ;;  %v313_v31 = vrot.slane %v214_v25, 4  ;;  %v330_v36 = vrot.slane %v275_v30, 4 }
  0x8c   : > { %v813_v23 = vunpack.i.h.bf16 %v962_v22  ;;  %v812_v24 = vunpack.i.l.bf16 %v962_v22  ;;  %v823_v26 = vunpack.i.h.bf16 %v821_v21  ;;  %v822_v27 = vunpack.i.l.bf16 %v821_v21 }
  0x8d   : > { %v347_v42 = vsel %vm345_vm2, %v923_v2, %v313_v31 }
  0x8e   : > { %v215_v32 = vsel %vm212_vm0, %v808_v17, %v812_v24  ;;  %v216_v33 = vsel %vm212_vm0, %v812_v24, %v813_v23  ;;  %v276_v35 = vsel %vm273_vm1, %v818_v19, %v822_v27  ;;  %v277_v37 = vsel %vm273_vm1, %v822_v27, %v823_v26 }
  0x8f   : > { %v967_v28 = vpop.permute.xlu1 %830  ;;  %v969_v29 = vpop.permute.xlu0 %825  ;;  %v314_v38 = vrot.slane %v215_v32, 4  ;;  %v315_v43 = vrot.slane %v216_v33, 4  ;;  %v331_v48 = vrot.slane %v276_v35, 4  ;;  %v332_v51 = vrot.slane %v277_v37, 4 }
  0x90   : > { %v827_v34 = vunpack.i.l.bf16 %v969_v29  ;;  %v832_v39 = vunpack.i.l.bf16 %v967_v28  ;;  %v833_v49 = vunpack.i.h.bf16 %v967_v28  ;;  %v828_v52 = vunpack.i.h.bf16 %v969_v29 }
  0x91   : > { %v349_v59 = vsel %vm345_vm2, %v927_v3, %v315_v43  ;;  %v348_v5 = vsel %vm345_vm2, %v919_v1, %v314_v38 }
  0x92   : > { %v213_v50 = vsel %vm212_vm0, %v827_v34, %v807_v18  ;;  %v274_v62 = vsel %vm273_vm1, %v832_v39, %v817_v20  ;;  %v278_v15 = vsel %vm273_vm1, %v823_v26, %v833_v49  ;;  %v217_v1 = vsel %vm212_vm0, %v813_v23, %v828_v52 }
  0x93   : > { %v980_v40 = vpop.permute.xlu1 %840  ;;  %v836_v41 = vpop.permute.xlu0 %835  ;;  %v312_v63 = vrot.slane %v213_v50, 4  ;;  %v329_v16 = vrot.slane %v274_v62, 4 }
  0x94   : > { %v843_v44 = vunpack.i.h.bf16 %v980_v40  ;;  %v842_v45 = vunpack.i.l.bf16 %v980_v40  ;;  %v838_v46 = vunpack.i.h.bf16 %v836_v41  ;;  %v837_v47 = vunpack.i.l.bf16 %v836_v41 }
  0x95   : > { %v346_v26 = vsel %vm345_vm2, %v917_v0, %v312_v63 }
  0x96   : > { %v241_v53 = vsel %vm239_vm3, %v837_v47, %v838_v46  ;;  %v243_v54 = vsel %vm239_vm3, %v842_v45, %v843_v44  ;;  %v242_v55 = vsel %vm239_vm3, %v838_v46, %v842_v45  ;;  %v316_v46 = vrot.slane %v217_v1, 4 }
  0x97   : > { %v851_v56 = vpop.permute.xlu1 %850  ;;  %v846_v57 = vpop.permute.xlu0 %845  ;;  %v355_v58 = vsel %vm345_vm2, %v241_v53, %v330_v36  ;;  %v357_v60 = vsel %vm345_vm2, %v243_v54, %v332_v51  ;;  %v356_v61 = vsel %vm345_vm2, %v242_v55, %v331_v48 }
  0x98   : > { %v847_v2 = vunpack.i.l.bf16 %v846_v57  ;;  %v853_v6 = vunpack.i.h.bf16 %v851_v56  ;;  %v774_v8 = vpack.c.bf16 %v355_v58, %v347_v42  ;;  %v778_v11 = vpack.c.bf16 %v357_v60, %v349_v59 }
  0x99   : > { %v780_v13 = vpack.c.bf16 %v356_v61, %v348_v5  ;;  %v852_v14 = vunpack.i.l.bf16 %v851_v56  ;;  %v848_v30 = vunpack.i.h.bf16 %v846_v57  ;;  %v362_v56 = vld [vmem:[%s1067_s1] sm:$0xff] }
  0x9a   : > { %775 = vmatprep.subr.bf16.mxu0 %v774_v8  ;;  %779 = vmatprep.subr.bf16.mxu1 %v778_v11  ;;  %v240_v18 = vsel %vm239_vm3, %v847_v2, %v837_v47  ;;  %v222_v25 = vsel %vm212_vm0, %v853_v6, %v827_v34 }
  0x9b   : > { %v861_v3 = vpop.permute.xlu1 %860  ;;  %v856_v17 = vpop.permute.xlu0 %855  ;;  %781 = vmatpush1.bf16.msra.mxu1 %v780_v13  ;;  %v354_v27 = vsel %vm345_vm2, %v240_v18, %v329_v16  ;;  %v218_v28 = vsel %vm212_vm0, %v828_v52, %v852_v14  ;;  %v219_v29 = vsel %vm212_vm0, %v852_v14, %v853_v6  ;;  %v319_v36 = vrot.slane %v222_v25, 4 }
  0x9c   : > { %v863_v19 = vunpack.i.h.bf16 %v861_v3  ;;  %v862_v20 = vunpack.i.l.bf16 %v861_v3  ;;  %v858_v21 = vunpack.i.h.bf16 %v856_v17  ;;  %v857_v24 = vunpack.i.l.bf16 %v856_v17 }
  0x9d   : > { %v776_v23 = vpack.c.bf16 %v354_v27, %v346_v26  ;;  %v318_v41 = vrot.slane %v219_v29, 4  ;;  %v317_v47 = vrot.slane %v218_v28, 4  ;;  %v244_v48 = vsel %vm239_vm3, %v843_v44, %v848_v30 }
  0x9e   : > { %v283_v31 = vsel %vm273_vm1, %v858_v21, %v832_v39  ;;  %v279_v33 = vsel %vm273_vm1, %v833_v49, %v857_v24  ;;  %v280_v22 = vsel %vm273_vm1, %v857_v24, %v858_v21  ;;  %v246_v0 = vsel %vm239_vm3, %v862_v20, %v863_v19 }
  0x9f   : > { %v336_v32 = vrot.slane %v283_v31, 4  ;;  %v289_v35 = vpop.permute.xlu1 %288  ;;  %v287_v34 = vpop.permute.xlu0 %286  ;;  %v335_v37 = vrot.slane %v280_v22, 4  ;;  %v256_v42 = vsel %vm239_vm3, %v863_v19, %v847_v2  ;;  %v334_v43 = vrot.slane %v279_v33, 4  ;;  %777 = vmatpush1.bf16.msra.mxu0 %v776_v23 }
  0xa0   : > { %v302_v38 = vsel %vm300_vm4, %v287_v34, %v289_v35  ;;  %v333_v39 = vrot.slane %v278_v15, 4  ;;  %v245_v52 = vsel %vm239_vm3, %v848_v30, %v862_v20  ;;  %v353_v55 = vsel %vm345_vm2, %v945_v10, %v319_v36 }
  0xa1   : > { %754 = vmatprep.subr.msk.mxu0 %vm345_vm2, %v302_v38  ;;  %v361_v45 = vsel %vm345_vm2, %v256_v42, %v336_v32  ;;  %v360_v51 = vsel %vm345_vm2, %v246_v0, %v335_v37  ;;  %v352_v44 = vsel %vm345_vm2, %v941_v9, %v318_v41  ;;  %v359_v57 = vsel %vm345_vm2, %v245_v52, %v334_v43 }
  0xa2   : > { %v786_v40 = vpack.c.bf16 %v361_v45, %v353_v55  ;;  %v788_v58 = vpack.c.bf16 %v360_v51, %v352_v44  ;;  %v358_v59 = vsel %vm345_vm2, %v244_v48, %v333_v39  ;;  %v351_v10 = vsel %vm345_vm2, %v937_v7, %v317_v47 }
  0xa3   : > { %v293_v49 = vpop.permute.xlu1 %292  ;;  %v291_v50 = vpop.permute.xlu0 %290  ;;  %v782_v63 = vpack.c.bf16 %v359_v57, %v351_v10  ;;  %v350_v9 = vsel %vm345_vm2, %v929_v4, %v316_v46 }
  0xa4   : > { %v303_v53 = vsel %vm300_vm4, %v289_v35, %v291_v50  ;;  %v304_v54 = vsel %vm300_vm4, %v291_v50, %v293_v49  ;;  %v784_v2 = vpack.c.bf16 %v358_v59, %v350_v9 }
  0xa5   : > { %757 = vmatprep.subr.msk.mxu1 %vm345_vm2, %v304_v54 }
  0xa6   : > { %758 = vmatpush1.msk.msra.mxu1 %vm345_vm2, %v303_v53 }
  0xa7   : > { %v295_v60 = vpop.permute.xlu1 %294  ;;  %v285_v61 = vpop.permute.xlu0 %284  ;;  %787 = vmatprep.subr.bf16.mxu1 %v786_v40  ;;  %759 = vmatmul.mubr.msk.f32.vlgmr.msra.gmra.mrb[0].mxu1 %vm369_vm5, %v362_v56 }
  0xa8   : > { %v301_v62 = vsel %vm300_vm4, %v285_v61, %v287_v34  ;;  %789 = vmatpush1.bf16.msra.mxu1 %v788_v58  ;;  %667 = vmatprep.mubr.f32.mxu1 %v880_v12  ;;  %v305_v11 = vsel %vm300_vm4, %v293_v49, %v295_v60 }
  0xa9   : > { %755 = vmatpush1.msk.msra.mxu0 %vm345_vm2, %v301_v62 }
  0xaa   : > { %756 = vmatmul.mubr.msk.f32.vlgmr.msra.gmra.mrb[0].mxu0 %vm369_vm5, %v362_v56  ;;  %783 = vmatprep.subr.bf16.mxu0 %v782_v63 }
  0xab   : > { %v299_v5 = vpop.permute.xlu1 %298  ;;  %v297_v6 = vpop.permute.xlu0 %296  ;;  %785 = vmatpush1.bf16.msra.mxu0 %v784_v2  ;;  %596 = vmatprep.mubr.f32.mxu0 %v880_v12 }
  0xac   : > { %v310_v7 = vsel %vm300_vm4, %v299_v5, %v285_v61  ;;  %v306_v8 = vsel %vm300_vm4, %v295_v60, %v297_v6  ;;  %v307_v4 = vsel %vm300_vm4, %v297_v6, %v299_v5 }
  0xad   : > { %760 = vmatprep.subr.msk.mxu0 %vm345_vm2, %v306_v8  ;;  %763 = vmatprep.subr.msk.mxu1 %vm345_vm2, %v310_v7 }
  0xae   : > { %764 = vmatpush1.msk.msra.mxu1 %vm345_vm2, %v307_v4 }
  0xaf   : > { %761 = vmatpush1.msk.msra.mxu0 %vm345_vm2, %v305_v11  ;;  %765 = vmatmul.mubr.msk.f32.vlgmr.msra.gmra.mrb[2].mxu1 %vm369_vm5, %v362_v56 }
  0xb0   : > { %762 = vmatmul.mubr.msk.f32.vlgmr.msra.gmra.mrb[2].mxu0 %vm369_vm5, %v362_v56 }
  0xbc   : > { %v367_v12 = vpop.permute.xlu0 %366 }
 0x17a   : > { %v527_v13 = vpop.f32.mrb[0].mxu1 }
 0x17b   : > { %v529_v14 = vpop.f32.mrb[1].mxu1  ;;  %v528_v15 = vadd.f32 %v527_v13, %v367_v12 }
 0x17c   : > { %v530_v16 = vadd.f32 %v529_v14, %v367_v12 }
 0x17d   : > { %v456_v3 = vpop.f32.mrb[0].mxu0  ;;  %676 = vst [vmem:[%s177_s30 + $0x10] sm:$0xff] %v528_v15 }
 0x17e   : > { %v458_v17 = vpop.f32.mrb[1].mxu0  ;;  %677 = vst [vmem:[%s177_s30 + $0x18] sm:$0xff] %v530_v16  ;;  %v457_v18 = vadd.f32 %v456_v3, %v367_v12 }
 0x17f   : > { %v459_v19 = vadd.f32 %v458_v17, %v367_v12 }
 0x180   : > { %674 = vst [vmem:[%s177_s30] sm:$0xff] %v457_v18 }
 0x181   : > { %675 = vst [vmem:[%s177_s30 + $0x8] sm:$0xff] %v459_v19 }
 0x182   : > { %v669_v20 = vpop.f32.mrb[2].mxu1 }
 0x183   : > { %v598_v21 = vpop.f32.mrb[2].mxu0  ;;  %v670_v24 = vadd.f32 %v669_v20, %v367_v12  ;;  %v671_v1 = vpop.f32.mrb[3].mxu1 }
 0x184   : > { %v599_v25 = vadd.f32 %v598_v21, %v367_v12  ;;  %v600_v26 = vpop.f32.mrb[3].mxu0  ;;  %v672_v27 = vadd.f32 %v671_v1, %v367_v12 }
 0x185   : > { %768 = vst [vmem:[%s177_s30 + $0x30] sm:$0xff] %v670_v24  ;;  %v601_v28 = vadd.f32 %v600_v26, %v367_v12 }
 0x186   : > { %766 = vst [vmem:[%s177_s30 + $0x20] sm:$0xff] %v599_v25  ;;  %769 = vst [vmem:[%s177_s30 + $0x38] sm:$0xff] %v672_v27 }
 0x187   : > { %767 = vst [vmem:[%s177_s30 + $0x28] sm:$0xff] %v601_v28 }
 0x188 PF: > { %s13_s12 = sadd.s32 1, %s875_s12  }
 0x189   : > { %p10_p4 = scmp.ge.s32.totalorder %s13_s12, 4  }
 0x18b   :  { %12 = sbr.rel (!%p10_p4) target bundleno = 1 (0x1), region = 64 }

</bundles_post_ra>
